<compile_context>
chip_gen: v6e
topology: v6e:2x2x1
jax: 0.10.0
libtpu: 0.0.40
codegen_flags: <defaults>
</compile_context>

<pallas_src>
import functools

import jax
import jax.numpy as jnp
from jax import lax
from jax.experimental import pallas as pl
from jax.experimental.pallas import tpu as pltpu

P_FLOOR = 5.0  # weight on the floor cross-entropy term (hard-coded in the module)


def _cdiv(a, b):
    return (a + b - 1) // b


@functools.partial(jax.jit, static_argnames=("max_tile_rows",))
def mean_absolute_position_loss(y_hat, y, floor_hat, floor, *, max_tile_rows=16384):
    y_hat = jnp.asarray(y_hat, jnp.float32)
    y = jnp.asarray(y, jnp.float32)
    floor_hat = jnp.asarray(floor_hat, jnp.float32)
    floor = jnp.asarray(floor, jnp.int32)

    B, D = y_hat.shape
    C = floor_hat.shape[1]
    N = B * D
    assert max_tile_rows % 128 == 0, "tile size must be lane-aligned"

    # --- lane-dense views; reshapes of contiguous data are free, no jnp.pad copies ---
    yh_flat = y_hat.reshape(1, N)       # batch*dim on the 128-lane axis
    yy_flat = y.reshape(1, N)
    lb_row = floor.reshape(1, B)        # labels as one lane-dense int32 row
    lg_t = floor_hat.T                  # (C, B): batch on the lane axis (layout plumbing)

    # --- batch tiling ---
    if B <= max_tile_rows:
        TB = B                          # single full-array tile (allowed for any B)
        nb = 1
    else:
        TB = max_tile_rows              # multiple of 128 -> lane-aligned blocks
        nb = _cdiv(B, TB)
    NC = 2 if nb >= 2 else 1            # v7x: split batch tiles over 2 TensorCores
    nbc = _cdiv(nb, NC)                 # tiles per core (arbitrary/reduction axis)
    inv_b = 1.0 / B

    def tile_idx(c, i):
        # Clamp so phantom iterations (when NC * nbc > nb) re-read the last valid tile;
        # their contribution is masked to zero inside the kernel.
        return jnp.minimum(c * nbc + i, nb - 1)

    def kernel(yh_ref, yy_ref, lg_ref, lb_ref, out_ref, acc_pos, acc_ce):
        c = pl.program_id(0)            # parallel (core) axis
        i = pl.program_id(1)            # arbitrary (reduction) axis

        @pl.when(i == 0)
        def _init():
            acc_pos[...] = jnp.zeros_like(acc_pos)
            acc_ce[...] = jnp.zeros_like(acc_ce)

        t = c * nbc + i                 # logical (unclamped) batch-tile index
        row0 = t * TB                   # first batch row covered by this tile

        # ---- position L1 term over the lane-dense flat view -----------------------
        yh = yh_ref[...]                # (1, TB*D)
        yy = yy_ref[...]
        lane = lax.broadcasted_iota(jnp.int32, yh.shape, 1)
        pos_valid = (row0 * D + lane) < N          # masks ragged tail / phantom tiles
        acc_pos[...] += jnp.where(pos_valid, jnp.abs(yh - yy), 0.0)

        # ---- cross-entropy term: logits (C, TB), batch on lanes --------------------
        lg = lg_ref[...]                # (C, TB) f32
        lb = lb_ref[...]                # (1, TB) int32
        m = jnp.max(lg, axis=0, keepdims=True)                       # (1, TB)
        lse = m + jnp.log(jnp.sum(jnp.exp(lg - m), axis=0, keepdims=True))
        cls = lax.broadcasted_iota(jnp.int32, lg.shape, 0)
        picked = jnp.sum(jnp.where(cls == lb, lg, 0.0), axis=0, keepdims=True)
        ce = lse - picked                                            # (1, TB)
        col = lax.broadcasted_iota(jnp.int32, ce.shape, 1)
        col_valid = (row0 + col) < B               # select (not multiply): OOB NaNs die
        acc_ce[...] += jnp.where(col_valid, ce, 0.0)

        # ---- collapse across lanes ONCE, on the last reduction step ----------------
        @pl.when(i == pl.num_programs(1) - 1)
        def _fini():
            total = jnp.sum(acc_pos[...]) + P_FLOOR * jnp.sum(acc_ce[...])
            out_ref[...] = jnp.full(out_ref.shape, total * inv_b, jnp.float32)

    partial_sums = pl.pallas_call(
        kernel,
        out_shape=jax.ShapeDtypeStruct((NC, 1, 1), jnp.float32),
        grid_spec=pltpu.PrefetchScalarGridSpec(
            num_scalar_prefetch=0,
            grid=(NC, nbc),
            in_specs=[
                pl.BlockSpec((1, TB * D), lambda c, i: (0, tile_idx(c, i))),  # y_hat flat
                pl.BlockSpec((1, TB * D), lambda c, i: (0, tile_idx(c, i))),  # y flat
                pl.BlockSpec((C, TB), lambda c, i: (0, tile_idx(c, i))),      # logits^T
                pl.BlockSpec((1, TB), lambda c, i: (0, tile_idx(c, i))),      # labels row
            ],
            out_specs=pl.BlockSpec((1, 1, 1), lambda c, i: (c, 0, 0)),        # per-core sum
            scratch_shapes=[
                pltpu.VMEM((1, TB * D), jnp.float32),   # per-lane |diff| accumulator
                pltpu.VMEM((1, TB), jnp.float32),       # per-column CE accumulator
            ],
        ),
        compiler_params=pltpu.CompilerParams(
            dimension_semantics=("parallel", "arbitrary")),
    )(yh_flat, yy_flat, lg_t, lb_row)

    return jnp.sum(partial_sums)        # sum the NC per-core partials -> scalar loss


def _ref_loss(y_hat, y, floor_hat, floor):
    pos = jnp.mean(jnp.sum(jnp.abs(y_hat - y), axis=1))
    logp = jax.nn.log_softmax(floor_hat, axis=1)
    ce = -jnp.mean(jnp.take_along_axis(logp, floor[:, None], axis=1))
    return pos + P_FLOOR * ce


if __name__ == "__main__":
    keys = jax.random.split(jax.random.PRNGKey(0), 8)

    # Small shapes consistent with the module: 2-D (x, y) positions, 13 floor classes.
    B, D, C = 2, 2, 13
    y_hat = jax.random.normal(keys[0], (B, D), jnp.float32) * 10.0
    y = jax.random.normal(keys[1], (B, D), jnp.float32) * 10.0
    floor_hat = jax.random.normal(keys[2], (B, C), jnp.float32)
    floor = jax.random.randint(keys[3], (B,), 0, C, dtype=jnp.int32)

    loss = jax.block_until_ready(mean_absolute_position_loss(y_hat, y, floor_hat, floor))
    ref = _ref_loss(y_hat, y, floor_hat, floor)
    assert loss.shape == () and loss.dtype == jnp.float32
    assert bool(jnp.isfinite(loss))
    assert abs(float(loss) - float(ref)) <= 1e-4 * max(1.0, abs(float(ref)))

    # Second (still small) check: exercises the multi-tile grid, the ragged-tail mask
    # and the 2-way parallel split by forcing a tiny 128-row tile.
    B2 = 300
    y_hat2 = jax.random.normal(keys[4], (B2, D), jnp.float32) * 5.0
    y2 = jax.random.normal(keys[5], (B2, D), jnp.float32) * 5.0
    floor_hat2 = jax.random.normal(keys[6], (B2, C), jnp.float32)
    floor2 = jax.random.randint(keys[7], (B2,), 0, C, dtype=jnp.int32)
    loss2 = jax.block_until_ready(
        mean_absolute_position_loss(y_hat2, y2, floor_hat2, floor2, max_tile_rows=128))
    ref2 = _ref_loss(y_hat2, y2, floor_hat2, floor2)
    assert abs(float(loss2) - float(ref2)) <= 1e-4 * max(1.0, abs(float(ref2)))

    print("KERNEL_OK")
</pallas_src>

<mosaic_0001>
module attributes {stable_mosaic.version = 11 : i64} {
  func.func @kernel(%arg0: i32, %arg1: i32, %arg2: memref<1x4xf32, #tpu.memory_space<vmem>>, %arg3: memref<1x4xf32, #tpu.memory_space<vmem>>, %arg4: memref<13x2xf32, #tpu.memory_space<vmem>>, %arg5: memref<1x2xi32, #tpu.memory_space<vmem>>, %arg6: memref<1x1x1xf32, #tpu.memory_space<vmem>>, %arg7: memref<1x4xf32, #tpu.memory_space<vmem>>, %arg8: memref<1x2xf32, #tpu.memory_space<vmem>>) attributes {dimension_semantics = [#tpu.dimension_semantics<parallel>, #tpu.dimension_semantics<arbitrary>], iteration_bounds = array<i64: 1, 1>, scalar_prefetch = 0 : i64, scratch_operands = 2 : i64, tpu.core_type = #tpu.core_type<tc>, window_params = [{transform_indices = @transform_0, window_bounds = array<i64: 1, 4>}, {transform_indices = @transform_1, window_bounds = array<i64: 1, 4>}, {transform_indices = @transform_2, window_bounds = array<i64: 13, 2>}, {transform_indices = @transform_3, window_bounds = array<i64: 1, 2>}, {transform_indices = @transform_4, window_bounds = array<i64: 1, 1, 1>}]} {
    %c0_i32 = arith.constant 0 : i32
    %0 = arith.cmpi eq, %arg1, %c0_i32 : i32
    %1 = arith.extui %0 : i1 to i32
    %c0_i32_0 = arith.constant 0 : i32
    %2 = arith.cmpi ne, %1, %c0_i32_0 : i32
    scf.if %2 {
      %cst_25 = arith.constant 0.000000e+00 : f32
      %53 = vector.broadcast %cst_25 : f32 to vector<1x4xf32>
      %c0_26 = arith.constant 0 : index
      %c0_27 = arith.constant 0 : index
      %54 = vector.load %arg7[%c0_26, %c0_27] : memref<1x4xf32, #tpu.memory_space<vmem>>, vector<1x4xf32>
      tpu.vector_store %arg7[%c0_26, %c0_27], %53 {strides = array<i32>} : memref<1x4xf32, #tpu.memory_space<vmem>>, vector<1x4xf32>,
      %cst_28 = arith.constant 0.000000e+00 : f32
      %55 = vector.broadcast %cst_28 : f32 to vector<1x2xf32>
      %c0_29 = arith.constant 0 : index
      %c0_30 = arith.constant 0 : index
      %56 = vector.load %arg8[%c0_29, %c0_30] : memref<1x2xf32, #tpu.memory_space<vmem>>, vector<1x2xf32>
      tpu.vector_store %arg8[%c0_29, %c0_30], %55 {strides = array<i32>} : memref<1x2xf32, #tpu.memory_space<vmem>>, vector<1x2xf32>,
    } else {
    }
    %c1_i32 = arith.constant 1 : i32
    %3 = arith.muli %arg0, %c1_i32 : i32
    %4 = arith.addi %3, %arg1 : i32
    %c2_i32 = arith.constant 2 : i32
    %5 = arith.muli %4, %c2_i32 : i32
    %c0 = arith.constant 0 : index
    %c0_1 = arith.constant 0 : index
    %6 = vector.load %arg2[%c0, %c0_1] : memref<1x4xf32, #tpu.memory_space<vmem>>, vector<1x4xf32>
    %c0_2 = arith.constant 0 : index
    %c0_3 = arith.constant 0 : index
    %7 = vector.load %arg3[%c0_2, %c0_3] : memref<1x4xf32, #tpu.memory_space<vmem>>, vector<1x4xf32>
    %8 = tpu.iota {dimensions = array<i32: 1>} : vector<1x4xi32>
    %c2_i32_4 = arith.constant 2 : i32
    %9 = arith.muli %5, %c2_i32_4 : i32
    %10 = vector.broadcast %9 : i32 to vector<1x4xi32>
    %11 = arith.addi %10, %8 : vector<1x4xi32>
    %c4_i32 = arith.constant 4 : i32
    %12 = vector.broadcast %c4_i32 : i32 to vector<1x4xi32>
    %13 = arith.cmpi slt, %11, %12 : vector<1x4xi32>
    %c0_5 = arith.constant 0 : index
    %c0_6 = arith.constant 0 : index
    %14 = vector.load %arg7[%c0_5, %c0_6] : memref<1x4xf32, #tpu.memory_space<vmem>>, vector<1x4xf32>
    %15 = arith.subf %6, %7 : vector<1x4xf32>
    %16 = math.absf %15 : vector<1x4xf32>
    %cst = arith.constant 0.000000e+00 : f32
    %17 = vector.broadcast %cst : f32 to vector<1x4xf32>
    %18 = arith.select %13, %16, %17 : vector<1x4xi1>, vector<1x4xf32>
    %19 = arith.addf %14, %18 : vector<1x4xf32>
    %c0_7 = arith.constant 0 : index
    %c0_8 = arith.constant 0 : index
    %20 = vector.load %arg7[%c0_7, %c0_8] : memref<1x4xf32, #tpu.memory_space<vmem>>, vector<1x4xf32>
    tpu.vector_store %arg7[%c0_7, %c0_8], %19 {strides = array<i32>} : memref<1x4xf32, #tpu.memory_space<vmem>>, vector<1x4xf32>,
    %c0_9 = arith.constant 0 : index
    %c0_10 = arith.constant 0 : index
    %21 = vector.load %arg4[%c0_9, %c0_10] : memref<13x2xf32, #tpu.memory_space<vmem>>, vector<13x2xf32>
    %c0_11 = arith.constant 0 : index
    %c0_12 = arith.constant 0 : index
    %22 = vector.load %arg5[%c0_11, %c0_12] : memref<1x2xi32, #tpu.memory_space<vmem>>, vector<1x2xi32>
    %cst_13 = arith.constant dense<0xFF800000> : vector<2xf32>
    %23 = vector.multi_reduction <maximumf>, %21, %cst_13 [0] : vector<13x2xf32> to vector<2xf32>
    %24 = vector.shape_cast %23 : vector<2xf32> to vector<1x2xf32>
    %25 = vector.broadcast %24 : vector<1x2xf32> to vector<13x2xf32>
    %26 = arith.subf %21, %25 : vector<13x2xf32>
    %27 = math.exp %26 : vector<13x2xf32>
    %cst_14 = arith.constant dense<0.000000e+00> : vector<2xf32>
    %28 = vector.multi_reduction <add>, %27, %cst_14 [0] : vector<13x2xf32> to vector<2xf32>
    %29 = vector.shape_cast %28 : vector<2xf32> to vector<1x2xf32>
    %30 = math.log %29 : vector<1x2xf32>
    %31 = arith.addf %24, %30 : vector<1x2xf32>
    %32 = tpu.iota {dimensions = array<i32: 0>} : vector<13x2xi32>
    %33 = vector.broadcast %22 : vector<1x2xi32> to vector<13x2xi32>
    %34 = arith.cmpi eq, %32, %33 : vector<13x2xi32>
    %cst_15 = arith.constant 0.000000e+00 : f32
    %35 = vector.broadcast %cst_15 : f32 to vector<13x2xf32>
    %36 = arith.select %34, %21, %35 : vector<13x2xi1>, vector<13x2xf32>
    %cst_16 = arith.constant dense<0.000000e+00> : vector<2xf32>
    %37 = vector.multi_reduction <add>, %36, %cst_16 [0] : vector<13x2xf32> to vector<2xf32>
    %38 = vector.shape_cast %37 : vector<2xf32> to vector<1x2xf32>
    %39 = arith.subf %31, %38 : vector<1x2xf32>
    %40 = tpu.iota {dimensions = array<i32: 1>} : vector<1x2xi32>
    %41 = vector.broadcast %5 : i32 to vector<1x2xi32>
    %42 = arith.addi %41, %40 : vector<1x2xi32>
    %c2_i32_17 = arith.constant 2 : i32
    %43 = vector.broadcast %c2_i32_17 : i32 to vector<1x2xi32>
    %44 = arith.cmpi slt, %42, %43 : vector<1x2xi32>
    %c0_18 = arith.constant 0 : index
    %c0_19 = arith.constant 0 : index
    %45 = vector.load %arg8[%c0_18, %c0_19] : memref<1x2xf32, #tpu.memory_space<vmem>>, vector<1x2xf32>
    %cst_20 = arith.constant 0.000000e+00 : f32
    %46 = vector.broadcast %cst_20 : f32 to vector<1x2xf32>
    %47 = arith.select %44, %39, %46 : vector<1x2xi1>, vector<1x2xf32>
    %48 = arith.addf %45, %47 : vector<1x2xf32>
    %c0_21 = arith.constant 0 : index
    %c0_22 = arith.constant 0 : index
    %49 = vector.load %arg8[%c0_21, %c0_22] : memref<1x2xf32, #tpu.memory_space<vmem>>, vector<1x2xf32>
    tpu.vector_store %arg8[%c0_21, %c0_22], %48 {strides = array<i32>} : memref<1x2xf32, #tpu.memory_space<vmem>>, vector<1x2xf32>,
    %c0_i32_23 = arith.constant 0 : i32
    %50 = arith.cmpi eq, %arg1, %c0_i32_23 : i32
    %51 = arith.extui %50 : i1 to i32
    %c0_i32_24 = arith.constant 0 : i32
    %52 = arith.cmpi ne, %51, %c0_i32_24 : i32
    scf.if %52 {
      %c0_25 = arith.constant 0 : index
      %c0_26 = arith.constant 0 : index
      %53 = vector.load %arg7[%c0_25, %c0_26] : memref<1x4xf32, #tpu.memory_space<vmem>>, vector<1x4xf32>
      %54 = vector.shape_cast %53 : vector<1x4xf32> to vector<1x1x4xf32>
      %cst_27 = arith.constant dense<0.000000e+00> : vector<1xf32>
      %55 = vector.multi_reduction <add>, %54, %cst_27 [1, 2] : vector<1x1x4xf32> to vector<1xf32>
      %56 = vector.shape_cast %55 : vector<1xf32> to vector<1x1x1xf32>
      %57 = vector.extract %56[0, 0, 0] : f32 from vector<1x1x1xf32>
      %c0_28 = arith.constant 0 : index
      %c0_29 = arith.constant 0 : index
      %58 = vector.load %arg8[%c0_28, %c0_29] : memref<1x2xf32, #tpu.memory_space<vmem>>, vector<1x2xf32>
      %59 = vector.shape_cast %58 : vector<1x2xf32> to vector<1x1x2xf32>
      %cst_30 = arith.constant dense<0.000000e+00> : vector<1xf32>
      %60 = vector.multi_reduction <add>, %59, %cst_30 [1, 2] : vector<1x1x2xf32> to vector<1xf32>
      %61 = vector.shape_cast %60 : vector<1xf32> to vector<1x1x1xf32>
      %62 = vector.extract %61[0, 0, 0] : f32 from vector<1x1x1xf32>
      %cst_31 = arith.constant 5.000000e+00 : f32
      %63 = arith.mulf %cst_31, %62 : f32
      %64 = arith.addf %57, %63 : f32
      %cst_32 = arith.constant 5.000000e-01 : f32
      %65 = arith.mulf %64, %cst_32 : f32
      %66 = vector.broadcast %65 : f32 to vector<1x1x1xf32>
      %c0_33 = arith.constant 0 : index
      %c0_34 = arith.constant 0 : index
      %c0_35 = arith.constant 0 : index
      %67 = vector.load %arg6[%c0_33, %c0_34, %c0_35] : memref<1x1x1xf32, #tpu.memory_space<vmem>>, vector<1x1x1xf32>
      tpu.vector_store %arg6[%c0_33, %c0_34, %c0_35], %66 {strides = array<i32>} : memref<1x1x1xf32, #tpu.memory_space<vmem>>, vector<1x1x1xf32>,
    } else {
    }
    return
  }
  func.func @transform_0(%arg0: i32, %arg1: i32) -> (i32, i32) {
    %c1_i32 = arith.constant 1 : i32
    %0 = arith.muli %arg0, %c1_i32 : i32
    %1 = arith.addi %0, %arg1 : i32
    %c0_i32 = arith.constant 0 : i32
    %2 = arith.minsi %1, %c0_i32 : i32
    %c0_i32_0 = arith.constant 0 : i32
    %c0_i32_1 = arith.constant 0 : i32
    return %c0_i32_0, %2 : i32, i32
  }
  func.func @transform_1(%arg0: i32, %arg1: i32) -> (i32, i32) {
    %c1_i32 = arith.constant 1 : i32
    %0 = arith.muli %arg0, %c1_i32 : i32
    %1 = arith.addi %0, %arg1 : i32
    %c0_i32 = arith.constant 0 : i32
    %2 = arith.minsi %1, %c0_i32 : i32
    %c0_i32_0 = arith.constant 0 : i32
    %c0_i32_1 = arith.constant 0 : i32
    return %c0_i32_0, %2 : i32, i32
  }
  func.func @transform_2(%arg0: i32, %arg1: i32) -> (i32, i32) {
    %c1_i32 = arith.constant 1 : i32
    %0 = arith.muli %arg0, %c1_i32 : i32
    %1 = arith.addi %0, %arg1 : i32
    %c0_i32 = arith.constant 0 : i32
    %2 = arith.minsi %1, %c0_i32 : i32
    %c0_i32_0 = arith.constant 0 : i32
    %c0_i32_1 = arith.constant 0 : i32
    return %c0_i32_0, %2 : i32, i32
  }
  func.func @transform_3(%arg0: i32, %arg1: i32) -> (i32, i32) {
    %c1_i32 = arith.constant 1 : i32
    %0 = arith.muli %arg0, %c1_i32 : i32
    %1 = arith.addi %0, %arg1 : i32
    %c0_i32 = arith.constant 0 : i32
    %2 = arith.minsi %1, %c0_i32 : i32
    %c0_i32_0 = arith.constant 0 : i32
    %c0_i32_1 = arith.constant 0 : i32
    return %c0_i32_0, %2 : i32, i32
  }
  func.func @transform_4(%arg0: i32, %arg1: i32) -> (i32, i32, i32) {
    %c0_i32 = arith.constant 0 : i32
    %c0_i32_0 = arith.constant 0 : i32
    %c0_i32_1 = arith.constant 0 : i32
    return %arg0, %c0_i32, %c0_i32_0 : i32, i32, i32
  }
}

</mosaic_0001>

<bundles_post_ra>
// kernel: mean_absolute_position_loss.1
= control target key start
LH: loop header
LB: loop body
LE: loop exit
PB: predicated region body
PF: predicated region fallthrough
CT: control target
= control target key end

     0   :  { %vm121_vm0 = vcmask 24576   ;;  %v129_v2 = vlaneseq  ;;  %v298_v3 = vmov 0.0   ;;  %vm145_vm1 = vcmask 15360   ;;  %s359_s0 = inlined_call_operand.vmem [shape: f32[1,4], index: 0, kind: input, shape index: {}]   ;;  %s360_s1 = inlined_call_operand.vmem [shape: f32[1,4], index: 1, kind: input, shape index: {}]   ;;  %s361_s2 = inlined_call_operand.vmem [shape: f32[13,2], index: 2, kind: input, shape index: {}]   ;;  %s362_s3 = inlined_call_operand.vmem [shape: s32[1,2], index: 3, kind: input, shape index: {}]   ;;  %s363_s4 = inlined_call_operand.hbm [shape: f32[1,1,1], index: 4, kind: output, shape index: {}]  }
   0x1   :  { %v127_v0 = vld [vmem:[%s359_s0] sm:$0x1]  ;;  %122 = vst.msk [vmem:[#allocation2] sm:$0x1] %vm121_vm0, %v298_v3  ;;  %v143_v6 = vld [vmem:[%s361_s2 + $0x8] sm:$0x1f] }
   0x2   :  { %v128_v1 = vld [vmem:[%s360_s1] sm:$0x1]  ;;  %v338_v7 = vand.u32 127, %v129_v2  ;;  %vm123_vm2 = vcmask 8192  }
   0x3   :  { %v136_v4 = vsub.f32 %v127_v0, %v128_v1  ;;  %v142_v5 = vld [vmem:[%s361_s2] sm:$0xff] }
   0x4   :  { %v146_v8 = vsel %vm145_vm1, %v142_v5, -inf }
   0x5   :  { %9 = vsyncpa [#allocation5], 0  ;;  %v137_v9 = vand.u32 2147483647, %v136_v4  ;;  %124 = vst.msk [vmem:[#allocation3] sm:$0x1] %vm123_vm2, %v298_v3 }
   0x6   :  { %vm147_vm3 = vcmask 12288   ;;  %vm134_vm4 = vcmp.lt.s32.totalorder %v338_v7, 4  ;;  %v175_v27 = vshrl.u32 %v129_v2, 7  ;;  %v263_v29 = vld [vmem:[%s362_s3] ss:$0 sm:$0xff]  ;;  %vm197_vm7 = vcmp.lt.s32.totalorder %v338_v7, 2 }
   0x7   :  { %v148_v10 = vsel %vm147_vm3, %v143_v6, -inf  ;;  %v138_v12 = vsel %vm134_vm4, %v137_v9, 0.0  ;;  %s299_s25 = smov [#allocation4]   ;;  %vm232_vm8 = vcmask 0  }
   0x8   :  { %v149_v11 = vmax.f32 %v146_v8, %v148_v10  ;;  %v135_v14 = vld [vmem:[#allocation2] sm:$0x1]  ;;  %v176_v28 = vadd.s32 8, %v175_v27  ;;  %vm181_vm5 = vcmp.eq.s32.totalorder %v175_v27, %v263_v29  ;;  %s240_s26 = sshll.u32 %s299_s25, 4  ;;  %s241_s26 = int_to_ptr.vmem [resolvable:$true] %s240_s26 }
   0x9   :  { %v139_v15 = vadd.f32 %v138_v12, %v135_v14  ;;  %v183_v32 = vsel %vm181_vm5, %v142_v5, 0.0  ;;  %s276_s28 = scalar_lea.vmem %s241_s26, 16  ;;  %s280_s29 = scalar_lea.vmem %s241_s26, 32 }
   0xa   :  { %v150_v13 = vrot.slane %v149_v11, 4  ;;  %vm182_vm6 = vcmp.eq.s32.totalorder %v176_v28, %v263_v29  ;;  %v185_v37 = vsel %vm145_vm1, %v183_v32, 0.0  ;;  %p277_p0 = scmp.ne.s32.totalorder %s241_s26, %s276_s28  ;;  %p281_p1 = scmp.lt.s32.totalorder %s241_s26, %s241_s26 }
   0xb   :  { %141 = vst.msk [vmem:[#allocation2] sm:$0x1] %vm121_vm0, %v139_v15  ;;  %v184_v33 = vsel %vm182_vm6, %v143_v6, 0.0  ;;  %p282_p2 = scmp.lt.s32.totalorder %s280_s29, %s276_s28 }
   0xc   :  { %v151_v16 = vmax.f32 %v149_v11, %v150_v13  ;;  %v186_v38 = vsel %vm147_vm3, %v184_v33, 0.0  ;;  %v198_v56 = vld [vmem:[#allocation3] sm:$0x1] }
   0xd   :  { %v187_v41 = vadd.f32 %v186_v38, %v185_v37  ;;  %p283_p3 = por %p282_p2, %p281_p1 }
   0xe   :  { %v152_v17 = vrot.slane %v151_v16, 2 }
   0xf   :  { %v188_v44 = vrot.slane %v187_v41, 4  ;;  %p284_p4 = pnand %p283_p3, %p277_p0 }
  0x10   :  { %v153_v18 = vmax.f32 %v151_v16, %v152_v17 }
  0x11   :  { %v189_v47 = vadd.f32 %v188_v44, %v187_v41 }
  0x12   :  { %v154_v19 = vrot.slane %v153_v18, 1  ;;  %v206_v21 = vld [vmem:[#allocation2] sm:$0x1] }
  0x13   :  { %v207_v22 = vsel %vm121_vm0, %v206_v21, 0.0  ;;  %v190_v48 = vrot.slane %v189_v47, 2 }
  0x14   :  { %v155_v20 = vmax.f32 %v153_v18, %v154_v19  ;;  %208 = vadd.xlane.f32.xlu0 %v207_v22 }
  0x15   :  { %v191_v49 = vadd.f32 %v190_v48, %v189_v47 }
  0x16   :  { %v156_v23 = vsub.f32 %v142_v5, %v155_v20  ;;  %v157_v24 = vsub.f32 %v143_v6, %v155_v20 }
  0x17   :  { %v192_v50 = vrot.slane %v191_v49, 1 }
  0x18   :  { %v158_v25 = vmul.f32 1.442695, %v156_v23  ;;  %v160_v26 = vmul.f32 1.442695, %v157_v24 }
  0x19   :  { %v193_v53 = vadd.f32 %v192_v50, %v191_v49 }
  0x1a   :  { %270 = vpow2.f32 %v158_v25 }
  0x1b   :  { %272 = vpow2.f32 %v160_v26 }
  0x27   :  { %v271_v30 = vpop.eup %270 }
  0x28   :  { %v273_v31 = vpop.eup %272  ;;  %v162_v34 = vsel %vm145_vm1, %v271_v30, 0.0 }
  0x29   :  { %v163_v35 = vsel %vm147_vm3, %v273_v31, 0.0 }
  0x2a   :  { %v164_v36 = vadd.f32 %v163_v35, %v162_v34 }
  0x2c   :  { %v165_v39 = vrot.slane %v164_v36, 4 }
  0x2e   :  { %v166_v40 = vadd.f32 %v165_v39, %v164_v36 }
  0x30   :  { %v167_v42 = vrot.slane %v166_v40, 2 }
  0x32   :  { %v168_v43 = vadd.f32 %v167_v42, %v166_v40 }
  0x34   :  { %v169_v45 = vrot.slane %v168_v43, 1 }
  0x36   :  { %v170_v46 = vadd.f32 %v169_v45, %v168_v43 }
  0x38   :  { %274 = vlog2.f32 %v170_v46 }
  0x45   :  { %v275_v51 = vpop.eup %274 }
  0x46   :  { %v172_v52 = vmul.f32 0.6931472, %v275_v51 }
  0x48   :  { %v173_v54 = vadd.f32 %v172_v52, %v155_v20 }
  0x4a   :  { %v194_v55 = vsub.f32 %v173_v54, %v193_v53 }
  0x4c   :  { %v199_v57 = vsel %vm197_vm7, %v194_v55, 0.0 }
  0x4d   :  { %v200_v58 = vadd.f32 %v199_v57, %v198_v56 }
  0x4f   :  { %202 = vst.msk [vmem:[#allocation3] sm:$0x1] %vm123_vm2, %v200_v58 }
  0x56   :  { %v217_v59 = vld [vmem:[#allocation3] sm:$0x1] }
  0x57   :  { %v218_v60 = vsel %vm123_vm2, %v217_v59, 0.0 }
  0x58   :  { %219 = vadd.xlane.f32.xlu0 %v218_v60 }
  0x9d   :  { %v209_v61 = vpop.xlane.xlu0 %208 }
  0x9e   :  { %v210_v62 = vrot.slane %v209_v61, 4 }
  0xa0   :  { %v211_v63 = vadd.f32 %v210_v62, %v209_v61 }
  0xa2   :  { %v212_v0 = vrot.slane %v211_v63, 2 }
  0xa4   :  { %v213_v1 = vadd.f32 %v212_v0, %v211_v63 }
  0xa6   :  { %v214_v2 = vrot.slane %v213_v1, 1 }
  0xa8   :  { %v215_v3 = vadd.f32 %v214_v2, %v213_v1 }
  0xaa   :  { %264 = vpush %v215_v3 }
  0xdb   :  { %s265_s2 = spop %264 }
  0xe1   :  { %v220_v4 = vpop.xlane.xlu0 %219 }
  0xe2   :  { %v221_v5 = vrot.slane %v220_v4, 4 }
  0xe4   :  { %v222_v6 = vadd.f32 %v221_v5, %v220_v4 }
  0xe6   :  { %v223_v7 = vrot.slane %v222_v6, 2 }
  0xe8   :  { %v224_v8 = vadd.f32 %v223_v7, %v222_v6 }
  0xea   :  { %v225_v9 = vrot.slane %v224_v8, 1 }
  0xec   :  { %v226_v10 = vadd.f32 %v225_v9, %v224_v8 }
  0xee   :  { %266 = vpush %v226_v10 }
 0x11f   :  { %s267_s3 = spop %266 }
 0x120   :  { %s228_s23 = smul.f32 5.0, %s267_s3 }
 0x122   :  { %s229_s24 = sadd.f32 %s265_s2, %s228_s23 }
 0x124   :  { %s230_s27 = smul.f32 0.5, %s229_s24 }
 0x126   :  { %v231_v11 = vstv %s230_s27 }
 0x127   :  { %233 = vst.msk [vmem:[#allocation4] sm:$0x1] %vm232_vm8, %v231_v11 }
 0x128   :  { %287 = shalt.err (!%p284_p4)
}
 0x129   :  { %243 = dma.vmem_to_hbm [thread:$0]  %s241_s26, 16, %s363_s4, [#allocation5]  }
 0x12a   :  { %296 = dma.done.wait [#allocation5], 16  }
 0x12b   :  { %297 = vsyncadd [#allocation5], 4294967280 }
 0x12c   :  { %247 = vsyncpa [#allocation5], 1 }

</bundles_post_ra>
